<compile_context>
chip_gen: v6e
topology: v6e:2x2x1
jax: 0.10.0
libtpu: 0.0.40
codegen_flags: <defaults>
</compile_context>

<pallas_src>
import jax
import jax.numpy as jnp
from jax.experimental import pallas as pl
from jax.experimental.pallas import tpu as pltpu

LN_EPS = 1e-5

VMEM = pl.BlockSpec(memory_space=pltpu.MemorySpace.VMEM)
SMEM = pl.BlockSpec(memory_space=pltpu.MemorySpace.SMEM)


def _round_up(x, m):
    return ((x + m - 1) // m) * m


# ----------------------------------------------------------------------------
# Kernel 1: LSTM over a per-example span (masked recurrence == pack_sequence +
#           LSTM final hidden state, since h/c are zero before the span and
#           frozen after it).
#
#   bounds_ref : SMEM (2,) int32  -> [min(starts), max(ends)]  (loop bounds)
#   x_ref      : (S, B, H)  f32   time-major hidden states
#   m_ref      : (S, B, 1)  f32   span-active mask
#   wih_ref    : (H, 4H)    bf16  gates concatenated in order i, f, g, o
#   whh_ref    : (H, 4H)    bf16
#   b_ref      : (1, 4H)    f32   (= b_ih + b_hh, concatenated)
#   h_out_ref  : (B, H)     f32   final hidden state
#   xp_ref     : (S, B, 4H) f32   VMEM scratch (precomputed input projection)
# ----------------------------------------------------------------------------
def _lstm_kernel(bounds_ref, x_ref, m_ref, wih_ref, whh_ref, b_ref,
                 h_out_ref, xp_ref):
    S, B, H = x_ref.shape

    # Prologue: one big parallel GEMM for all timesteps, bias folded in, so the
    # serial loop only carries h @ W_hh on the critical path.
    xb = x_ref[...].astype(jnp.bfloat16)
    xp_ref[...] = (jnp.einsum("sbh,hg->sbg", xb, wih_ref[...],
                              preferred_element_type=jnp.float32)
                   + b_ref[...][None])                       # (S, B, 4H)

    whh = whh_ref[...]                                       # (H, 4H) bf16, hoisted
    t_lo = bounds_ref[0]
    t_hi = bounds_ref[1]

    def step(t, carry):
        h, c = carry
        gates = xp_ref[t] + jnp.dot(h.astype(jnp.bfloat16), whh,
                                    preferred_element_type=jnp.float32)  # (B, 4H)
        i = jax.nn.sigmoid(gates[:, 0 * H:1 * H])
        f = jax.nn.sigmoid(gates[:, 1 * H:2 * H])
        g = jnp.tanh(gates[:, 2 * H:3 * H])
        o = jax.nn.sigmoid(gates[:, 3 * H:4 * H])
        c_new = f * c + i * g
        h_new = o * jnp.tanh(c_new)
        keep = m_ref[t] > 0.5                                # (B, 1) bool
        h = jnp.where(keep, h_new, h)
        c = jnp.where(keep, c_new, c)
        return h, c

    h0 = jnp.zeros((B, H), jnp.float32)
    c0 = jnp.zeros((B, H), jnp.float32)
    h, _ = jax.lax.fori_loop(t_lo, t_hi, step, (h0, c0))
    h_out_ref[...] = h


# ----------------------------------------------------------------------------
# Kernel 2 (fused heads), grid over sequence tiles:
#   sub_out = sigmoid(x @ W_sub + b_sub) * mask
#   ob_out  = sigmoid(LayerNorm(x + h) @ W_ob + b_ob)
# Weights/biases are zero-padded to lane-dense width (>= 128); wrapper slices.
# ----------------------------------------------------------------------------
def _heads_kernel(x_ref, m_ref, h_ref, wsub_ref, bsub_ref,
                  gamma_ref, beta_ref, wob_ref, bob_ref,
                  sub_ref, ob_ref):
    x = x_ref[...]                                           # (B, ts, H) f32
    xb = x.astype(jnp.bfloat16)

    # subject head
    sub_logits = jnp.einsum("bsh,ho->bso", xb, wsub_ref[...],
                            preferred_element_type=jnp.float32) + bsub_ref[...]
    sub_ref[...] = jax.nn.sigmoid(sub_logits) * m_ref[...]

    # object head: LayerNorm in f32, matmul operands in bf16
    y = x + h_ref[...][:, None, :]
    mu = jnp.mean(y, axis=-1, keepdims=True)
    var = jnp.mean(jnp.square(y - mu), axis=-1, keepdims=True)
    yn = (y - mu) * jax.lax.rsqrt(var + LN_EPS)
    yn = yn * gamma_ref[...] + beta_ref[...]
    ob_logits = jnp.einsum("bsh,ho->bso", yn.astype(jnp.bfloat16), wob_ref[...],
                           preferred_element_type=jnp.float32) + bob_ref[...]
    ob_ref[...] = jax.nn.sigmoid(ob_logits)


# ----------------------------------------------------------------------------
# Wrapper
# ----------------------------------------------------------------------------
def bert_heads_forward(params, text_embed, mask, sub_idx, classes_num):
    """text_embed: (B,S,H) f32; mask: (B,S) f32; sub_idx: (B,2) int32 spans."""
    B, S, H = text_embed.shape
    G = 4 * H
    OP_SUB = 128
    OP_OB = max(128, _round_up(classes_num * 2, 128))

    # ---- prepare kernel-ready params (bf16 matmul operands, fused layouts) ---
    w_ih_c = jnp.transpose(params["w_ih"], (1, 0, 2)).reshape(H, G).astype(jnp.bfloat16)
    w_hh_c = jnp.transpose(params["w_hh"], (1, 0, 2)).reshape(H, G).astype(jnp.bfloat16)
    b_c = params["b_lstm"].reshape(1, G).astype(jnp.float32)

    w_sub_p = jnp.zeros((H, OP_SUB), jnp.bfloat16).at[:, :2].set(
        params["w_sub"].astype(jnp.bfloat16))
    b_sub_p = jnp.zeros((1, OP_SUB), jnp.float32).at[:, :2].set(params["b_sub"])
    w_ob_p = jnp.zeros((H, OP_OB), jnp.bfloat16).at[:, :classes_num * 2].set(
        params["w_ob"].astype(jnp.bfloat16))
    b_ob_p = jnp.zeros((1, OP_OB), jnp.float32).at[:, :classes_num * 2].set(params["b_ob"])

    # ---- subject-span LSTM merge --------------------------------------------
    starts = sub_idx[:, 0]
    ends = sub_idx[:, 1]
    t = jnp.arange(S, dtype=jnp.int32)
    span_mask = ((t[None, :] >= starts[:, None]) &
                 (t[None, :] < ends[:, None])).astype(jnp.float32)      # (B, S)
    bounds = jnp.stack([jnp.clip(jnp.min(starts), 0, S),
                        jnp.clip(jnp.max(ends), 0, S)]).astype(jnp.int32)

    # TODO(synk): at production sizes (B=32,S=512,H=768) avoid this HBM
    # transpose + whole-S VMEM residency: keep x in pl.ANY and double-buffer
    # per-timestep (B,H) slices with pltpu.make_async_copy.
    x_tm = jnp.transpose(text_embed, (1, 0, 2))                          # (S,B,H)
    m_tm = jnp.transpose(span_mask, (1, 0))[..., None]                   # (S,B,1)

    sub_embed_merge = pl.pallas_call(
        _lstm_kernel,
        out_shape=jax.ShapeDtypeStruct((B, H), jnp.float32),
        in_specs=[SMEM, VMEM, VMEM, VMEM, VMEM, VMEM],
        out_specs=VMEM,
        scratch_shapes=[pltpu.VMEM((S, B, G), jnp.float32)],
    )(bounds, x_tm, m_tm, w_ih_c, w_hh_c, b_c)

    # ---- fused sub + ob heads (grid over sequence tiles) --------------------
    ts = S if S <= 512 else 512
    assert S % ts == 0, "sequence length must be divisible by the seq tile"
    mask3 = mask[..., None].astype(jnp.float32)                          # (B,S,1)

    sub_pad, ob_pad = pl.pallas_call(
        _heads_kernel,
        out_shape=(jax.ShapeDtypeStruct((B, S, OP_SUB), jnp.float32),
                   jax.ShapeDtypeStruct((B, S, OP_OB), jnp.float32)),
        grid=(S // ts,),
        in_specs=[
            pl.BlockSpec((B, ts, H), lambda s: (0, s, 0)),      # text_embed
            pl.BlockSpec((B, ts, 1), lambda s: (0, s, 0)),      # attention mask
            pl.BlockSpec((B, H), lambda s: (0, 0)),             # LSTM hidden
            pl.BlockSpec((H, OP_SUB), lambda s: (0, 0)),        # W_sub (padded)
            pl.BlockSpec((1, OP_SUB), lambda s: (0, 0)),        # b_sub (padded)
            pl.BlockSpec((1, H), lambda s: (0, 0)),             # gamma
            pl.BlockSpec((1, H), lambda s: (0, 0)),             # beta
            pl.BlockSpec((H, OP_OB), lambda s: (0, 0)),         # W_ob (padded)
            pl.BlockSpec((1, OP_OB), lambda s: (0, 0)),         # b_ob (padded)
        ],
        out_specs=(pl.BlockSpec((B, ts, OP_SUB), lambda s: (0, s, 0)),
                   pl.BlockSpec((B, ts, OP_OB), lambda s: (0, s, 0))),
        compiler_params=pltpu.CompilerParams(
            dimension_semantics=("parallel",)),
    )(text_embed, mask3, sub_embed_merge, w_sub_p, b_sub_p,
      params["gamma"], params["beta"], w_ob_p, b_ob_p)

    sub_prob = sub_pad[..., :2]
    ob_prob = ob_pad[..., :classes_num * 2].reshape(B, S, classes_num, 2)
    return sub_prob, ob_prob


# ----------------------------------------------------------------------------
# Pure-JAX f32 reference (for a numerical sanity check)
# ----------------------------------------------------------------------------
def reference_forward(params, text_embed, mask, sub_idx, classes_num):
    B, S, H = text_embed.shape
    sub_prob = (jax.nn.sigmoid(text_embed @ params["w_sub"] + params["b_sub"])
                * mask[..., None])

    starts, ends = sub_idx[:, 0], sub_idx[:, 1]
    t = jnp.arange(S, dtype=jnp.int32)
    span_mask = ((t[None, :] >= starts[:, None]) &
                 (t[None, :] < ends[:, None])).astype(jnp.float32)

    h = jnp.zeros((B, H), jnp.float32)
    c = jnp.zeros((B, H), jnp.float32)
    for step in range(S):
        x_t = text_embed[:, step, :]
        m_t = span_mask[:, step][:, None]
        gi = x_t @ params["w_ih"][0] + h @ params["w_hh"][0] + params["b_lstm"][0]
        gf = x_t @ params["w_ih"][1] + h @ params["w_hh"][1] + params["b_lstm"][1]
        gg = x_t @ params["w_ih"][2] + h @ params["w_hh"][2] + params["b_lstm"][2]
        go = x_t @ params["w_ih"][3] + h @ params["w_hh"][3] + params["b_lstm"][3]
        i, f = jax.nn.sigmoid(gi), jax.nn.sigmoid(gf)
        g, o = jnp.tanh(gg), jax.nn.sigmoid(go)
        c_new = f * c + i * g
        h_new = o * jnp.tanh(c_new)
        h = m_t * h_new + (1.0 - m_t) * h
        c = m_t * c_new + (1.0 - m_t) * c

    y = text_embed + h[:, None, :]
    mu = jnp.mean(y, axis=-1, keepdims=True)
    var = jnp.mean(jnp.square(y - mu), axis=-1, keepdims=True)
    yn = (y - mu) / jnp.sqrt(var + LN_EPS) * params["gamma"] + params["beta"]
    ob_prob = jax.nn.sigmoid(yn @ params["w_ob"] + params["b_ob"])
    return sub_prob, ob_prob.reshape(B, S, classes_num, 2)


# ----------------------------------------------------------------------------
def init_params(key, hidden, classes_num):
    ks = jax.random.split(key, 8)
    scale = 0.1
    return {
        # sub_classifier: Linear(H, 2)  (stored as (H, 2) = PyTorch W.T)
        "w_sub": scale * jax.random.normal(ks[0], (hidden, 2), jnp.float32),
        "b_sub": scale * jax.random.normal(ks[1], (1, 2), jnp.float32),
        # sub_lstm: gate order i, f, g, o; stored transposed as (4, H, H)
        "w_ih": scale * jax.random.normal(ks[2], (4, hidden, hidden), jnp.float32),
        "w_hh": scale * jax.random.normal(ks[3], (4, hidden, hidden), jnp.float32),
        "b_lstm": scale * jax.random.normal(ks[4], (4, hidden), jnp.float32),
        # layernorm
        "gamma": jnp.ones((1, hidden), jnp.float32),
        "beta": jnp.zeros((1, hidden), jnp.float32),
        # ob_classifier: Linear(H, classes_num * 2)
        "w_ob": scale * jax.random.normal(ks[5], (hidden, classes_num * 2), jnp.float32),
        "b_ob": scale * jax.random.normal(ks[6], (1, classes_num * 2), jnp.float32),
    }


if __name__ == "__main__":
    # TODO(synk): tokenizer + pretrained BERT encoder and the threshold-driven
    # subject-span enumeration in forward() are data/checkpoint dependent; the
    # encoder output (text_embed, mask) and sub_idx spans are taken as inputs.
    B, S, H = 2, 8, 32
    CLASSES = 3

    key = jax.random.PRNGKey(0)
    k_p, k_x = jax.random.split(key)
    params = init_params(k_p, H, CLASSES)

    text_embed = jax.random.normal(k_x, (B, S, H), jnp.float32)
    mask = jnp.ones((B, S), jnp.float32).at[1, 6:].set(0.0)      # padded tail
    sub_idx = jnp.array([[1, 4], [2, 6]], dtype=jnp.int32)       # per-example spans

    sub_prob, ob_prob = bert_heads_forward(params, text_embed, mask, sub_idx, CLASSES)
    jax.block_until_ready((sub_prob, ob_prob))

    ref_sub, ref_ob = reference_forward(params, text_embed, mask, sub_idx, CLASSES)
    assert sub_prob.shape == (B, S, 2)
    assert ob_prob.shape == (B, S, CLASSES, 2)
    # bf16 matmul operands (f32 accumulation) vs. f32 reference -> loose-but-
    # meaningful tolerance on sigmoid outputs in [0, 1].
    assert jnp.allclose(sub_prob, ref_sub, atol=2e-2, rtol=0.0)
    assert jnp.allclose(ob_prob, ref_ob, atol=2e-2, rtol=0.0)

    print("KERNEL_OK")
</pallas_src>

<mosaic_0001>
module attributes {stable_mosaic.version = 11 : i64} {
  func.func @_lstm_kernel(%arg0: memref<2xi32, #tpu.memory_space<smem>>, %arg1: memref<8x2x32xf32, #tpu.memory_space<vmem>>, %arg2: memref<8x2x1xf32, #tpu.memory_space<vmem>>, %arg3: memref<32x128xbf16, #tpu.memory_space<vmem>>, %arg4: memref<32x128xbf16, #tpu.memory_space<vmem>>, %arg5: memref<1x128xf32, #tpu.memory_space<vmem>>, %arg6: memref<2x32xf32, #tpu.memory_space<vmem>>, %arg7: memref<8x2x128xf32, #tpu.memory_space<vmem>>) attributes {dimension_semantics = [], scalar_prefetch = 0 : i64, scratch_operands = 1 : i64, tpu.core_type = #tpu.core_type<tc>} {
    %c0 = arith.constant 0 : index
    %c0_0 = arith.constant 0 : index
    %c0_1 = arith.constant 0 : index
    %0 = vector.load %arg1[%c0, %c0_0, %c0_1] : memref<8x2x32xf32, #tpu.memory_space<vmem>>, vector<8x2x32xf32>
    %1 = arith.truncf %0 : vector<8x2x32xf32> to vector<8x2x32xbf16>
    %c0_2 = arith.constant 0 : index
    %c0_3 = arith.constant 0 : index
    %2 = vector.load %arg3[%c0_2, %c0_3] : memref<32x128xbf16, #tpu.memory_space<vmem>>, vector<32x128xbf16>
    "tpu.trace_start"() <{level = 10 : i32, message = "sbh,hg->sbg"}> : () -> ()
    %cst = arith.constant dense<0.000000e+00> : vector<8x2x128xf32>
    %3 = tpu.matmul %1, %2, %cst {dimension_numbers = #tpu.dot_dimension_numbers<[2], [0], [0, 1], [1], [0, 0, 0, 1, 1, 1], [], []>} : vector<8x2x32xbf16>, vector<32x128xbf16>, vector<8x2x128xf32> -> vector<8x2x128xf32>
    "tpu.trace_stop"() : () -> ()
    %c0_4 = arith.constant 0 : index
    %c0_5 = arith.constant 0 : index
    %4 = vector.load %arg5[%c0_4, %c0_5] : memref<1x128xf32, #tpu.memory_space<vmem>>, vector<1x128xf32>
    %5 = vector.shape_cast %4 : vector<1x128xf32> to vector<1x1x128xf32>
    %6 = vector.broadcast %5 : vector<1x1x128xf32> to vector<8x2x128xf32>
    %7 = arith.addf %3, %6 : vector<8x2x128xf32>
    %c0_6 = arith.constant 0 : index
    %c0_7 = arith.constant 0 : index
    %c0_8 = arith.constant 0 : index
    %8 = vector.load %arg7[%c0_6, %c0_7, %c0_8] : memref<8x2x128xf32, #tpu.memory_space<vmem>>, vector<8x2x128xf32>
    tpu.vector_store %arg7[%c0_6, %c0_7, %c0_8], %7 {strides = array<i32>} : memref<8x2x128xf32, #tpu.memory_space<vmem>>, vector<8x2x128xf32>,
    %c0_9 = arith.constant 0 : index
    %c0_10 = arith.constant 0 : index
    %9 = vector.load %arg4[%c0_9, %c0_10] : memref<32x128xbf16, #tpu.memory_space<vmem>>, vector<32x128xbf16>
    %c0_11 = arith.constant 0 : index
    %10 = memref.load %arg0[%c0_11] : memref<2xi32, #tpu.memory_space<smem>>
    %c1 = arith.constant 1 : index
    %11 = memref.load %arg0[%c1] : memref<2xi32, #tpu.memory_space<smem>>
    %cst_12 = arith.constant 0.000000e+00 : f32
    %12 = vector.broadcast %cst_12 : f32 to vector<2x32xf32>
    %cst_13 = arith.constant 0.000000e+00 : f32
    %13 = vector.broadcast %cst_13 : f32 to vector<2x32xf32>
    %14 = arith.subi %11, %10 : i32
    %15 = arith.addi %10, %14 : i32
    %c1_i32 = arith.constant 1 : i32
    %16:2 = scf.for %arg8 = %10 to %15 step %c1_i32 iter_args(%arg9 = %12, %arg10 = %13) -> (vector<2x32xf32>, vector<2x32xf32>)  : i32 {
      %18 = arith.index_cast %arg8 : i32 to index
      %c0_16 = arith.constant 0 : index
      %c0_17 = arith.constant 0 : index
      %19 = vector.load %arg7[%18, %c0_16, %c0_17] : memref<8x2x128xf32, #tpu.memory_space<vmem>>, vector<1x2x128xf32>
      %20 = vector.shape_cast %19 : vector<1x2x128xf32> to vector<2x128xf32>
      %21 = arith.truncf %arg9 : vector<2x32xf32> to vector<2x32xbf16>
      %cst_18 = arith.constant dense<0.000000e+00> : vector<2x128xf32>
      %22 = tpu.matmul %21, %9, %cst_18 {dimension_numbers = #tpu.dot_dimension_numbers<[1], [0], [0], [1], [0, 0, 1, 1], [], []>} : vector<2x32xbf16>, vector<32x128xbf16>, vector<2x128xf32> -> vector<2x128xf32>
      %23 = arith.addf %20, %22 : vector<2x128xf32>
      %24 = vector.extract_strided_slice %23 {offsets = [0, 0], sizes = [2, 32], strides = [1, 1]} : vector<2x128xf32> to vector<2x32xf32>
      %25 = arith.negf %24 : vector<2x32xf32>
      %26 = math.exp %25 : vector<2x32xf32>
      %cst_19 = arith.constant 1.000000e+00 : f32
      %27 = vector.broadcast %cst_19 : f32 to vector<2x32xf32>
      %28 = arith.addf %27, %26 : vector<2x32xf32>
      %29 = arith.divf %27, %28 : vector<2x32xf32>
      %30 = vector.extract_strided_slice %23 {offsets = [0, 32], sizes = [2, 32], strides = [1, 1]} : vector<2x128xf32> to vector<2x32xf32>
      %31 = arith.negf %30 : vector<2x32xf32>
      %32 = math.exp %31 : vector<2x32xf32>
      %cst_20 = arith.constant 1.000000e+00 : f32
      %33 = vector.broadcast %cst_20 : f32 to vector<2x32xf32>
      %34 = arith.addf %33, %32 : vector<2x32xf32>
      %35 = arith.divf %33, %34 : vector<2x32xf32>
      %36 = vector.extract_strided_slice %23 {offsets = [0, 64], sizes = [2, 32], strides = [1, 1]} : vector<2x128xf32> to vector<2x32xf32>
      %37 = math.tanh %36 : vector<2x32xf32>
      %38 = vector.extract_strided_slice %23 {offsets = [0, 96], sizes = [2, 32], strides = [1, 1]} : vector<2x128xf32> to vector<2x32xf32>
      %39 = arith.negf %38 : vector<2x32xf32>
      %40 = math.exp %39 : vector<2x32xf32>
      %cst_21 = arith.constant 1.000000e+00 : f32
      %41 = vector.broadcast %cst_21 : f32 to vector<2x32xf32>
      %42 = arith.addf %41, %40 : vector<2x32xf32>
      %43 = arith.divf %41, %42 : vector<2x32xf32>
      %44 = arith.mulf %35, %arg10 : vector<2x32xf32>
      %45 = arith.mulf %29, %37 : vector<2x32xf32>
      %46 = arith.addf %44, %45 : vector<2x32xf32>
      %47 = math.tanh %46 : vector<2x32xf32>
      %48 = arith.mulf %43, %47 : vector<2x32xf32>
      %49 = arith.index_cast %arg8 : i32 to index
      %c0_22 = arith.constant 0 : index
      %c0_23 = arith.constant 0 : index
      %50 = vector.load %arg2[%49, %c0_22, %c0_23] : memref<8x2x1xf32, #tpu.memory_space<vmem>>, vector<1x2x1xf32>
      %51 = vector.shape_cast %50 : vector<1x2x1xf32> to vector<2x1xf32>
      %cst_24 = arith.constant 5.000000e-01 : f32
      %52 = vector.broadcast %cst_24 : f32 to vector<2x1xf32>
      %53 = arith.cmpf ogt, %51, %52 : vector<2x1xf32>
      %54 = vector.shape_cast %53 : vector<2x1xi1> to vector<2x1xi1>
      %55 = vector.broadcast %54 : vector<2x1xi1> to vector<2x32xi1>
      %56 = arith.select %55, %48, %arg9 : vector<2x32xi1>, vector<2x32xf32>
      %57 = vector.shape_cast %53 : vector<2x1xi1> to vector<2x1xi1>
      %58 = vector.broadcast %57 : vector<2x1xi1> to vector<2x32xi1>
      %59 = arith.select %58, %46, %arg10 : vector<2x32xi1>, vector<2x32xf32>
      scf.yield %56, %59 : vector<2x32xf32>, vector<2x32xf32>
    }
    %c0_14 = arith.constant 0 : index
    %c0_15 = arith.constant 0 : index
    %17 = vector.load %arg6[%c0_14, %c0_15] : memref<2x32xf32, #tpu.memory_space<vmem>>, vector<2x32xf32>
    tpu.vector_store %arg6[%c0_14, %c0_15], %16#0 {strides = array<i32>} : memref<2x32xf32, #tpu.memory_space<vmem>>, vector<2x32xf32>,
    return
  }
}

</mosaic_0001>

<bundles_post_ra>
// kernel: tpu_custom_call.1
= control target key start
LH: loop header
LB: loop body
LE: loop exit
PB: predicated region body
PF: predicated region fallthrough
CT: control target
= control target key end

     0   :  { %11 = vsyncpa [#allocation6], 0  ;;  %s770_s0 = inlined_call_operand.vmem [shape: s32[2], index: 0, kind: input, shape index: {}]   ;;  %s771_s1 = inlined_call_operand.vmem [shape: f32[8,2,32], index: 1, kind: input, shape index: {}]   ;;  %s772_s2 = inlined_call_operand.vmem [shape: f32[8,2,1], index: 2, kind: input, shape index: {}]   ;;  %s773_s3 = inlined_call_operand.hbm [shape: bf16[32,128], index: 3, kind: input, shape index: {}]   ;;  %s774_s4 = inlined_call_operand.hbm [shape: bf16[32,128], index: 4, kind: input, shape index: {}]   ;;  %s775_s5 = inlined_call_operand.vmem [shape: f32[1,128], index: 5, kind: input, shape index: {}]   ;;  %s776_s6 = inlined_call_operand.hbm [shape: f32[2,32], index: 6, kind: output, shape index: {}]  }
   0x1   :  { %12 = vsyncpa [#allocation4], 0 }
   0x2   :  { %13 = vsyncpa [#allocation9], 0 }
   0x3   :  { %14 = vsyncpa [#allocation5], 0  ;;  %s21_s23 = sshll.u32 %s770_s0, 4  ;;  %s22_s23 = int_to_ptr.vmem [resolvable:$true] %s21_s23 }
   0x4   :  { %s517_s24 = scalar_lea.vmem %s22_s23, 16  ;;  %p522_p1 = scmp.lt.s32.totalorder %s22_s23, %s22_s23 }
   0x5   :  { %p518_p0 = scmp.ne.s32.totalorder %s22_s23, %s517_s24  ;;  %p523_p2 = scmp.lt.s32.totalorder %s517_s24, %s517_s24 }
   0x7   :  { %p524_p3 = por %p523_p2, %p522_p1 }
   0x9   :  { %p525_p4 = pnand %p524_p3, %p518_p0 }
   0xb   :  { %528 = shalt.err (!%p525_p4)
}
   0xc   :  { %s629_s25 = smov [#allocation3]   ;;  %s630_s26 = smov [#allocation7]  }
   0xd   :  { %24 = dma.vmem_to_smem %s22_s23, 16, %s629_s25, [#allocation6]  }
   0xe   :  { %s34_s27 = sshll.u32 %s630_s26, 4  ;;  %s35_s27 = int_to_ptr.vmem [resolvable:$true] %s34_s27 }
   0xf   :  { %s537_s28 = scalar_lea.vmem %s35_s27, 256  ;;  %p542_p6 = scmp.lt.s32.totalorder %s35_s27, %s35_s27 }
  0x10   :  { %p538_p5 = scmp.ne.s32.totalorder %s35_s27, %s537_s28  ;;  %p543_p7 = scmp.lt.s32.totalorder %s537_s28, %s537_s28 }
  0x12   :  { %p544_p8 = por %p543_p7, %p542_p6 }
  0x14   :  { %p545_p9 = pnand %p544_p8, %p538_p5 }
  0x16   :  { %548 = shalt.err (!%p545_p9)
}
  0x17   :  { %s631_s0 = smov 64   ;;  %s632_s29 = smov 4  }
  0x18   :  { %40 = dma.hbm_to_vmem [thread:$0]  %s773_s3, 256, %s35_s27, [#allocation4], %s631_s0, %s631_s0, %s632_s29  }
  0x19   :  { %s633_s8 = smov [#allocation8]  }
  0x1a   :  { %s46_s9 = sshll.u32 %s633_s8, 4  ;;  %s47_s9 = int_to_ptr.vmem [resolvable:$true] %s46_s9 }
  0x1b   :  { %s557_s10 = scalar_lea.vmem %s47_s9, 256  ;;  %p562_p11 = scmp.lt.s32.totalorder %s47_s9, %s47_s9 }
  0x1c   :  { %p558_p10 = scmp.ne.s32.totalorder %s47_s9, %s557_s10  ;;  %p563_p12 = scmp.lt.s32.totalorder %s557_s10, %s557_s10 }
  0x1e   :  { %p564_p13 = por %p563_p12, %p562_p11 }
  0x20   :  { %p565_p0 = pnand %p564_p13, %p558_p10 }
  0x22   :  { %568 = shalt.err (!%p565_p0)
}
  0x23   :  { %52 = dma.hbm_to_vmem [thread:$0]  %s774_s4, 256, %s47_s9, [#allocation9], %s631_s0, %s631_s0, %s632_s29  }
  0x24   :  { %605 = dma.done.wait [#allocation6], 16  }
  0x25   :  { %606 = vsyncadd [#allocation6], 4294967280 }
  0x26   :  { %607 = dma.done.wait [#allocation4], 256  }
  0x27   :  { %608 = vsyncadd [#allocation4], 4294967040 }
  0x28   :  { %609 = dma.done.wait [#allocation9], 256  }
  0x29   :  { %610 = vsyncadd [#allocation9], 4294967040 }
  0x2a   :  { %64 = sfence }
  0x2b   :  { %v505_v0 = vld [vmem:[#allocation7 + $0x8] sm:$0xff]   ;;  %v634_v1 = vmov 0.0   ;;  %v506_v2 = vld [vmem:[#allocation7] sm:$0xff]   ;;  %v107_v3 = vlaneseq  ;;  %vm635_vm0 = vmmov 0   ;;  %v66_v4 = vld [vmem:[%s771_s1] sm:$0x3] }
  0x2c   :  { %441 = vmatprep.subr.bf16.mxu0 %v634_v1  ;;  %445 = vmatprep.mubr.msk.bf16.mxu0 %vm635_vm0, %v634_v1  ;;  %v67_v5 = vld [vmem:[%s771_s1 + $0x2] sm:$0x3]  ;;  %v68_v6 = vld [vmem:[%s771_s1 + $0x4] sm:$0x3]  ;;  %v69_v7 = vld [vmem:[%s771_s1 + $0x6] sm:$0x3] }
  0x2d   :  { %442 = vmatpush3.bf16.msra.mxu0 %v505_v0  ;;  %v70_v8 = vld [vmem:[%s771_s1 + $0x8] sm:$0x3]  ;;  %v71_v9 = vld [vmem:[%s771_s1 + $0xa] sm:$0x3]  ;;  %v72_v10 = vld [vmem:[%s771_s1 + $0xc] sm:$0x3]  ;;  %v418_v15 = vpack.c.bf16 %v67_v5, %v66_v4  ;;  %v419_v16 = vpack.c.bf16 %v69_v7, %v68_v6 }
  0x2e   :  { %443 = vmatprep.subr.bf16.mxu0 %v634_v1  ;;  %v73_v11 = vld [vmem:[%s771_s1 + $0xe] sm:$0x3]  ;;  %v636_v12 = vmov 1966171168   ;;  %v108_v14 = vshrl.u32 %v107_v3, 7  ;;  %v420_v17 = vpack.c.bf16 %v71_v9, %v70_v8  ;;  %vm171_vm1 = vcmask 261120  }
  0x2f   :  { %v105_v13 = vunpack.c.l.s4 %v636_v12  ;;  %v421_v18 = vpack.c.bf16 %v73_v11, %v72_v10  ;;  %v714_v30 = vld [vmem:[#allocation8] sm:$0xf]  ;;  %v716_v31 = vld [vmem:[#allocation8 + $0x4] sm:$0xf]  ;;  %v718_v32 = vld [vmem:[#allocation8 + $0x8] sm:$0xf] }
  0x30   :  { %v720_v33 = vld [vmem:[#allocation8 + $0xc] sm:$0xf]  ;;  %s722_s1 = sld [smem:[#allocation3]]   ;;  %v637_v34 = vmov 1983009808   ;;  %v731_v58 = vmov 0.0  }
  0x31   :  { %444 = vmatpush3.bf16.msra.mxu0 %v506_v2  ;;  %v106_v19 = vunpack.c.0.s8 %v105_v13  ;;  %s724_s27 = sld [smem:[#allocation3 + $0x1]]  ;;  %v163_v35 = vunpack.c.l.s4 %v637_v34  ;;  %v417_v37 = vld [vmem:[%s775_s5] ss:$0 sm:$0xff] }
  0x32   :  { %v161_v38 = vcombine.low %v417_v37, %v417_v37 }
  0x33   :  { %v109_v20 = vsub.s32 %v106_v19, %v108_v14  ;;  %v164_v36 = vunpack.c.0.s8 %v163_v35 }
  0x35   :  { %v110_v21 = vrot.slane %v418_v15, %v109_v20  ;;  %v117_v22 = vrot.slane %v419_v16, %v109_v20  ;;  %v124_v23 = vrot.slane %v420_v17, %v109_v20  ;;  %v131_v24 = vrot.slane %v421_v18, %v109_v20 }
  0x36   :  { %v167_v39 = vsub.s32 %v164_v36, %v108_v14 }
  0x37   :  { %v132_v25 = vcombine.low %v110_v21, %v117_v22  ;;  %v133_v26 = vcombine.low %v124_v23, %v131_v24  ;;  %p407_p1 = scmp.ge.s32.totalorder %s722_s1, %s724_s27 }
  0x38   :  { %v168_v40 = vrot.slane %v161_v38, %v167_v39 }
  0x39   :  { %v140_v27 = vrot.slane %v132_v25, %v109_v20  ;;  %v147_v28 = vrot.slane %v133_v26, %v109_v20 }
  0x3a   :  { %v169_v41 = vcombine.low %v168_v40, %v168_v40 }
  0x3b   :  { %v148_v29 = vcombine.low %v140_v27, %v147_v28 }
  0x3d   :  { %446 = vmatmul.mubr.msk.bf16.vlgmr.msra.gmra.mxu0 %vm171_vm1, %v148_v29 }
  0xfd   :  { %v209_v42 = vpop.f32.mrf.mxu0 }
  0xfe   :  { %v210_v43 = vadd.f32 %v209_v42, %v169_v41 }
  0xff   :  { %v447_v44 = vpop.f32.mrf.mxu0 }
 0x100   :  { %v218_v45 = vcombine.high %v210_v43, %v210_v43  ;;  %v225_v46 = vrot.slane %v210_v43, %v167_v39  ;;  %425 = vst.sshfl [vmem:[#allocation2] sm:$0x3 pattern:$0x76325410] %v210_v43 }
 0x101   :  { %v212_v47 = vpop.f32.mrf.mxu0 }
 0x102   :  { %v232_v48 = vrot.slane %v218_v45, %v167_v39  ;;  %v233_v49 = vcombine.high %v225_v46, %v225_v46  ;;  %426 = vst.sshfl [vmem:[#allocation2 + $0x4] sm:$0x3 pattern:$0x76325410] %v218_v45  ;;  %v213_v50 = vadd.f32 %v212_v47, %v169_v41 }
 0x103   :  { %v448_v51 = vpop.f32.mrf.mxu0 }
 0x104   :  { %v234_v52 = vcombine.high %v232_v48, %v232_v48  ;;  %261 = vst [vmem:[#allocation2 + $0x2] sm:$0x3] %v233_v49  ;;  %v235_v53 = vcombine.high %v213_v50, %v213_v50  ;;  %v242_v54 = vrot.slane %v213_v50, %v167_v39  ;;  %427 = vst.sshfl [vmem:[#allocation2 + $0x8] sm:$0x3 pattern:$0x76325410] %v213_v50 }
 0x106   :  { %263 = vst [vmem:[#allocation2 + $0x6] sm:$0x3] %v234_v52  ;;  %v249_v55 = vrot.slane %v235_v53, %v167_v39  ;;  %v250_v56 = vcombine.high %v242_v54, %v242_v54  ;;  %428 = vst.sshfl [vmem:[#allocation2 + $0xc] sm:$0x3 pattern:$0x76325410] %v235_v53 }
 0x107   :  { %410 = sbr.rel (%p407_p1) target bundleno = 963 (0x3c3), region = 59 }
 0x108   :  { %v251_v57 = vcombine.high %v249_v55, %v249_v55  ;;  %265 = vst [vmem:[#allocation2 + $0xa] sm:$0x3] %v250_v56 }
 0x10a   :  { %267 = vst [vmem:[#allocation2 + $0xe] sm:$0x3] %v251_v57 }
 0x10c   :  { %v733_v59 = vmov 0.0   ;;  %v735_v60 = vmov 0.0  }
 0x10d LB: > { %v432_v61 = vcombine.low %v718_v32, %v720_v33  ;;  %v638_v62 = vmov 0.0   ;;  %v285_v63 = vpack.c.bf16 %v619_v60, %v619_v60  ;;  %v431_v0 = vcombine.low %v714_v30, %v716_v31  ;;  %s640_s5 = smov 32   ;;  %s430_s29 = sshll.u32 %s623_s1, 1  ;;  %s623_s1 = sphi %s722_s1, %s277_s1   ;;  %v619_v60 = vphi %v735_v60, %v777_v60   ;;  %v615_v59 = vphi %v733_v59, %v378_v59  }
 0x10e   : > { %449 = vmatprep.subr.bf16.mxu0 %v638_v62  ;;  %vm639_vm2 = vmmov 0   ;;  %s283_s30 = scalar_lea.vmem [#allocation2], %s430_s29  ;;  %v641_v8 = vmov 0   ;;  %s642_s7 = smov 64  }
 0x10f   : > { %450 = vmatpush3.bf16.msra.mxu0 %v432_v61  ;;  %453 = vmatprep.mubr.msk.bf16.mxu0 %vm639_vm2, %v638_v62  ;;  %s369_s10 = scalar_lea.vmem %s772_s2, %s430_s29  ;;  %s277_s1 = sadd.s32 1, %s623_s1  }
 0x110   : > { %451 = vmatprep.subr.bf16.mxu0 %v638_v62  ;;  %287 = vrot.lane.b32.xlu0 %v285_v63, %s640_s5  ;;  %v370_v13 = vld [vmem:[%s369_s10] sm:$0x3]  ;;  %p276_p2 = scmp.ge.s32.totalorder %s277_s1, %s724_s27 }
 0x111   : > { %v284_v2 = vld [vmem:[%s283_s30] sm:$0x3]  ;;  %507 = vset.pattern.permute.xlu1 %v641_v8  ;;  %508 = vset.pattern.permute.xlu0 %v641_v8  ;;  %vm371_vm3 = vcmp.gt.f32.partialorder %v370_v13, 0.5 }
 0x112   : > { %v372_v17 = vsel %vm371_vm3, 1, %v641_v8 }
 0x113   : > { %452 = vmatpush3.bf16.msra.mxu0 %v431_v0 }
 0x182   : > { %v288_v1 = vpop.permute.xlu0 %287 }
 0x183   : > { %454 = vmatmul.mubr.msk.bf16.vlgmr.msra.gmra.mxu0 %vm171_vm1, %v288_v1 }
 0x243   : > { %v338_v3 = vpop.f32.mrf.mxu0 }
 0x244   : > { %v344_v4 = vadd.f32 %v338_v3, %v284_v2 }
 0x245   : > { %v455_v5 = vpop.f32.mrf.mxu0 }
 0x246   : > { %509 = vtanh.f32 %v344_v4  ;;  %v434_v10 = vmul.f32 -1.442695, %v344_v4 }
 0x247   : > { %v341_v6 = vpop.f32.mrf.mxu0 }
 0x248   : > { %511 = vpow2.f32 %v434_v10 }
 0x249   : > { %v456_v7 = vpop.f32.mrf.mxu0 }
 0x253   : > { %v510_v9 = vpop.eup %509 }
 0x254   : > { %354 = vrot.lane.b32.xlu0 %v510_v9, %s642_s7 }
 0x255   : > { %v512_v11 = vpop.eup %511 }
 0x256   : > { %v348_v12 = vadd.f32 1.0, %v512_v11 }
 0x258   : > { %513 = vrcp.f32 %v348_v12 }
 0x265   : > { %v514_v14 = vpop.eup %513 }
 0x266   : > { %v352_v18 = vmul.f32 %v615_v59, %v514_v14 }
 0x2c6   : > { %v355_v15 = vpop.permute.xlu0 %354 }
 0x2c7   : > { %v357_v16 = vmul.f32 %v514_v14, %v355_v15 }
 0x2c9   : > { %359 = vrot.lane.b32.xlu1 %v357_v16, %s640_s5 }
 0x2cd   : > { %374 = vperm.xlu1 %507, %v372_v17  }
 0x33b   : > { %v360_v19 = vpop.permute.xlu1 %359 }
 0x33c   : > { %v362_v20 = vadd.f32 %v360_v19, %v352_v18 }
 0x33e   : > { %515 = vtanh.f32 %v362_v20 }
 0x348   : > { %v375_v21 = vpop.permute.xlu1 %374 }
 0x349   : > { %vm376_vm4 = vcmp.eq.s32.totalorder %v375_v21, 1 }
 0x34a   : > { %v378_v59 = vsel %vm376_vm4, %v362_v20, %v615_v59  }
 0x34b   : > { %v516_v22 = vpop.eup %515 }
 0x34c   : > { %365 = vrot.lane.b32.xlu0 %v516_v22, %s642_s7 }
 0x3be   : > { %v366_v23 = vpop.permute.xlu0 %365  ;;  %279 = sbr.rel (!%p276_p2) target bundleno = 269 (0x10d), region = 65 }
 0x3bf   : > { %v368_v24 = vmul.f32 %v514_v14, %v366_v23 }
 0x3c1   : > { %v377_v25 = vsel %vm376_vm4, %v368_v24, %v619_v60  }
 0x3c2   : > { %v777_v60 = vmov %v377_v25  ;;  %v778_v58 = vmov (%p276_p2), %v377_v25 }
 0x3c3 PF:  { %s643_s11 = smov 32   ;;  %s644_s12 = smov [#allocation10]   ;;  %vm383_vm5 = vcmask 254976   ;;  %v627_v58 = vphi %v731_v58, %v778_v58  }
 0x3c4   :  { %380 = vrot.lane.b32.xlu0 %v627_v58, %s643_s11  ;;  %s391_s3 = sshll.u32 %s644_s12, 4  ;;  %s392_s3 = int_to_ptr.vmem [resolvable:$true] %s391_s3 }
 0x3c5   :  { %s569_s13 = scalar_lea.vmem %s392_s3, 32  ;;  %p574_p4 = scmp.lt.s32.totalorder %s392_s3, %s392_s3 }
 0x3c6   :  { %p570_p3 = scmp.ne.s32.totalorder %s392_s3, %s569_s13  ;;  %p575_p5 = scmp.lt.s32.totalorder %s569_s13, %s569_s13 }
 0x3c8   :  { %p576_p6 = por %p575_p5, %p574_p4 }
 0x3ca   :  { %p577_p7 = pnand %p576_p6, %p570_p3 }
 0x436   :  { %v381_v26 = vpop.permute.xlu0 %380 }
 0x437   :  { %384 = vst.msk [vmem:[#allocation10] sm:$0x3] %vm383_vm5, %v381_v26 }
 0x438   :  { %580 = shalt.err (!%p577_p7)
}
 0x439   :  { %394 = dma.vmem_to_hbm [thread:$0]  %s392_s3, 32, %s776_s6, [#allocation5]  }
 0x43a   :  { %611 = dma.done.wait [#allocation5], 32  }
 0x43b   :  { %612 = vsyncadd [#allocation5], 4294967264 }
 0x43c   :  { %398 = vsyncpa [#allocation4], 1 }
 0x43d   :  { %399 = vsyncpa [#allocation9], 1 }
 0x43e   :  { %400 = vsyncpa [#allocation5], 1 }
 0x43f   :  { %401 = vsyncpa [#allocation6], 1 }

</bundles_post_ra>
